<compile_context>
chip_gen: v5e
topology: v5e:2x2
jax: 0.10.0
libtpu: 0.0.40
codegen_flags: <defaults>
</compile_context>

<pallas_src>
import functools

import jax
import jax.numpy as jnp
from jax import lax
from jax.experimental import pallas as pl
from jax.experimental.pallas import tpu as pltpu

_MIN_PALLAS_BYTES = 64 * 1024   # below this, plain XLA beats a kernel launch


@functools.lru_cache(maxsize=1)
def _device_config():
    """Generation-dependent tiling knobs (conservative fallback if unknown)."""
    kind = ""
    try:
        kind = (getattr(jax.devices()[0], "device_kind", "") or "").lower()
    except Exception:
        kind = ""
    if "v7" in kind:
        # v7x: ~3.2 TB/s HBM, 64 MiB VMEM per TC, 2 TensorCores per chip.
        return dict(block_bytes=12 << 20, max_block_bytes=16 << 20,
                    row_splits=2, deep_buffer=True)
    if "v6" in kind:
        # v6e: ~1.4 TB/s HBM, 128 MiB VMEM, 1 TC.
        return dict(block_bytes=8 << 20, max_block_bytes=12 << 20,
                    row_splits=1, deep_buffer=False)
    # v5e / v5p / unknown: v5e scoped-VMEM default is 16 MiB -> stay conservative.
    return dict(block_bytes=4 << 20, max_block_bytes=6 << 20,
                row_splits=1, deep_buffer=False)


def _sublane_multiple(dtype) -> int:
    """Sublane packing multiple for a dtype (8 for f32, 16 for bf16, 32 for int8)."""
    return max(8, 32 // jnp.dtype(dtype).itemsize)


def _abs_int_pow(x, norm):
    """|x|**norm, using repeated VPU multiplies for small integer norms."""
    if norm == 2:
        return x * x
    if norm == 1:
        return jnp.abs(x)
    if isinstance(norm, int) and 1 < norm <= 8:
        a = jnp.abs(x)
        r = a
        for _ in range(norm - 1):
            r = r * a
        return r
    return jnp.abs(x) ** norm


def _pnorm_pow_kernel(x_ref, o_ref, acc_ref, *, norm, rows, cols, block_rows,
                      col_block, steps_per_split, n_col_steps,
                      row_tail, col_tail):
    """Accumulate sum(|x|^norm) for one row-split into a VMEM vector accumulator."""
    s = pl.program_id(0)   # row split (parallel across TensorCores on v7x)
    i = pl.program_id(1)   # row block within the split
    j = pl.program_id(2)   # column block

    @pl.when(jnp.logical_and(i == 0, j == 0))
    def _init():
        acc_ref[...] = jnp.zeros_like(acc_ref)

    def _accumulate(mask_rows, mask_cols):
        # Native-dtype load (bf16 reads half the HBM bytes); upcast in-kernel.
        x = x_ref[...].astype(jnp.float32)
        if mask_rows or mask_cols:
            mask = None
            if mask_rows:
                # May be <= 0 for entirely-empty blocks (uneven row split).
                row_limit = rows - (s * steps_per_split + i) * block_rows
                row_ids = lax.broadcasted_iota(jnp.int32, x.shape, 0)
                mask = row_ids < row_limit
            if mask_cols:
                col_limit = cols - j * col_block
                col_ids = lax.broadcasted_iota(jnp.int32, x.shape, 1)
                cmask = col_ids < col_limit
                mask = cmask if mask is None else jnp.logical_and(mask, cmask)
            x = jnp.where(mask, x, 0.0)   # mask BEFORE any arithmetic
        # Per-step partial reduce over rows only: the carried dependency is an
        # elementwise f32 VMEM add, not a cross-lane reduce + scalar chain.
        acc_ref[...] += jnp.sum(_abs_int_pow(x, norm), axis=0, keepdims=True)

    if row_tail or col_tail:
        # Fast unmasked path for interior blocks; masked path only on ragged
        # tail blocks (keeps the hot loop off the VALU-bound cliff).
        clean = None
        if row_tail:
            full_row_blocks = rows // block_rows
            clean = (s * steps_per_split + i) < full_row_blocks
        if col_tail:
            c = j < (n_col_steps - 1)
            clean = c if clean is None else jnp.logical_and(clean, c)
        pl.when(clean)(lambda: _accumulate(False, False))
        pl.when(jnp.logical_not(clean))(lambda: _accumulate(row_tail, col_tail))
    else:
        _accumulate(False, False)

    @pl.when(jnp.logical_and(i == steps_per_split - 1, j == n_col_steps - 1))
    def _finalize():
        # Single cross-lane reduce + scalar store per row-split.
        o_ref[0, 0] = jnp.sum(acc_ref[...])


def _as_2d(param):
    """Lane-friendly 2-D view of a parameter, or None if not representable."""
    if param.ndim >= 2:
        return param.reshape(-1, param.shape[-1])
    if param.ndim == 1:
        return param.reshape(1, -1)
    return None   # 0-d scalars -> XLA


def _sum_abs_pow_xla(param, norm):
    return jnp.sum(_abs_int_pow(param.astype(jnp.float32), norm))


def _choose_tiles(rows, cols, itemsize, sub_mult, block_bytes):
    """Pick (block_rows, col_block) so one block is <= block_bytes."""
    min_rows = rows if rows < sub_mult else sub_mult
    # Tile the trailing dim (multiples of 128) only when even the thinnest
    # full-width row slab would exceed the block budget.
    if cols < 256 or min_rows * cols * itemsize <= block_bytes:
        col_block = cols
    else:
        col_block = (block_bytes // (min_rows * itemsize * 128)) * 128
        col_block = max(128, col_block)
        if col_block >= cols:
            col_block = cols
    row_bytes = col_block * itemsize
    target_rows = max(1, block_bytes // row_bytes)
    if target_rows >= rows:
        block_rows = rows
    else:
        block_rows = max(sub_mult, (target_rows // sub_mult) * sub_mult)
    return block_rows, col_block


def _sum_abs_pow_pallas(x2d, norm, block_bytes, row_splits, deep_buffer):
    rows, cols = x2d.shape
    itemsize = x2d.dtype.itemsize
    sub_mult = _sublane_multiple(x2d.dtype)

    block_rows, col_block = _choose_tiles(rows, cols, itemsize, sub_mult, block_bytes)

    n_row_blocks = pl.cdiv(rows, block_rows)
    n_col_steps = pl.cdiv(cols, col_block)

    num_splits = max(1, min(int(row_splits), n_row_blocks))
    steps_per_split = pl.cdiv(n_row_blocks, num_splits)

    # Static flags: does any block hang over the row / column end?
    row_tail = (num_splits * steps_per_split * block_rows) != rows
    col_tail = (n_col_steps * col_block) != cols

    def in_index_map(s, i, j):
        blk = s * steps_per_split + i
        # Empty trailing blocks of an uneven split re-read the last real block
        # (kept in-bounds); the kernel masks their contribution to zero.
        blk = jnp.minimum(blk, n_row_blocks - 1)
        return blk, j

    blk_nbytes = block_rows * col_block * itemsize
    in_spec_kwargs = {}
    if deep_buffer and blk_nbytes < (2 << 20):
        # v7x: sub-us per-block compute exposes DMA issue latency; a 3-deep
        # pipeline hides it at negligible VMEM cost (blocks are small here).
        in_spec_kwargs["pipeline_mode"] = pl.Buffered(3)
    in_spec = pl.BlockSpec((block_rows, col_block), in_index_map, **in_spec_kwargs)

    # Raise scoped VMEM only when the double-buffered block needs it.
    vmem_needed = 2 * blk_nbytes + (8 << 20)
    vmem_limit = int(vmem_needed) if vmem_needed > (16 << 20) else None

    kernel = functools.partial(
        _pnorm_pow_kernel, norm=norm, rows=rows, cols=cols,
        block_rows=block_rows, col_block=col_block,
        steps_per_split=steps_per_split, n_col_steps=n_col_steps,
        row_tail=row_tail, col_tail=col_tail)

    out = pl.pallas_call(
        kernel,
        out_shape=jax.ShapeDtypeStruct((num_splits, 1), jnp.float32),
        grid=(num_splits, steps_per_split, n_col_steps),
        in_specs=[in_spec],
        out_specs=pl.BlockSpec((1, 1), lambda s, i, j: (s, 0),
                               memory_space=pltpu.SMEM),
        scratch_shapes=[pltpu.VMEM((1, col_block), jnp.float32)],
        compiler_params=pltpu.CompilerParams(
            dimension_semantics=("parallel", "arbitrary", "arbitrary"),
            vmem_limit_bytes=vmem_limit),
    )(x2d)
    return jnp.sum(out)   # sum the per-split (per-TensorCore) partials


def _sum_abs_pow(param, norm, *, block_bytes, min_pallas_bytes, row_splits,
                 deep_buffer):
    """sum(|param|^norm) -> f32 scalar, using Pallas for large params."""
    nbytes = param.size * param.dtype.itemsize
    x2d = _as_2d(param)
    if x2d is None or nbytes < min_pallas_bytes:
        # TODO(synk): fuse all qualifying parameters into one pallas_call over
        # concatenated flat storage via PrefetchScalarGridSpec (per-step base
        # offset / valid-length tables); tiny params currently use plain XLA,
        # which is cheaper than a kernel launch anyway.
        return _sum_abs_pow_xla(param, norm)
    # NOTE: params with trailing dim < 128 (e.g. the (520, 64) demo embedding)
    # sit in (8,128)-padded HBM layout; relayouting in the wrapper would cost a
    # full extra HBM pass, so we stream them as-is. Fix the storage layout
    # upstream if this matters.
    return _sum_abs_pow_pallas(x2d, norm, block_bytes, row_splits, deep_buffer)


def regularizer_forward(named_parameters, weight_decay: float = 0.01, norm: int = 2, *,
                        block_bytes: int = None,
                        min_pallas_bytes: int = _MIN_PALLAS_BYTES,
                        row_splits: int = None) -> jax.Array:
    """JAX/Pallas equivalent of Regularizer.forward.

    Args:
        named_parameters: list of (name, array) tuples.
        weight_decay: multiplier of the regularized loss.
        norm: order of the norm.
        block_bytes: target bytes per Pallas input block (None -> per-generation default).
        min_pallas_bytes: parameters smaller than this use plain XLA.
        row_splits: leading parallel grid size (None -> 2 on v7x, else 1).

    Returns:
        float32 array of shape (1,).
    """
    cfg = _device_config()
    if block_bytes is None:
        block_bytes = cfg["block_bytes"]
    block_bytes = max(1, min(int(block_bytes), cfg["max_block_bytes"]))
    if row_splits is None:
        row_splits = cfg["row_splits"]

    total = jnp.float32(0.0)
    inv = jnp.float32(1.0 / norm)
    for name, param in named_parameters:
        if "weight" not in name:
            continue
        s = _sum_abs_pow(param, norm, block_bytes=block_bytes,
                         min_pallas_bytes=min_pallas_bytes,
                         row_splits=row_splits, deep_buffer=cfg["deep_buffer"])
        # TODO(synk): add an epsilon / custom_vjp if this is ever differentiated
        # (d/ds s**(1/p) is inf at s == 0); forward-pass semantics are exact.
        total = total + s ** inv
    return jnp.reshape(total * jnp.float32(weight_decay), (1,))


if __name__ == "__main__":
    key = jax.random.PRNGKey(0)
    k = jax.random.split(key, 6)

    # Deterministic synthetic "model" parameters (small shapes, mixed dtypes).
    named_params = [
        # >= 64 KiB -> Pallas streaming path
        ("embedding.weight", jax.random.normal(k[0], (520, 64), jnp.float32)),
        # tiny params -> XLA fallback path (unless forced through Pallas below)
        ("fc1.weight", jax.random.normal(k[1], (48, 32), jnp.float32)),
        ("fc1.bias", jax.random.normal(k[2], (48,), jnp.float32)),          # skipped
        ("fc2.weight", jax.random.normal(k[3], (8, 48), jnp.float32).astype(jnp.bfloat16)),
        ("norm.weight", jax.random.normal(k[4], (100, 96), jnp.float32).astype(jnp.bfloat16)),
        # wide trailing dim -> exercises column tiling + column-tail masking
        ("wide.weight", jax.random.normal(k[5], (16, 640), jnp.float32)),
    ]

    weight_decay = 0.01
    norm = 2

    # Pure-JAX reference.
    ref = jnp.float32(0.0)
    for name, p in named_params:
        if "weight" in name:
            ref = ref + jnp.sum(jnp.abs(p.astype(jnp.float32)) ** norm) ** (1.0 / norm)
    ref = jnp.reshape(ref * jnp.float32(weight_decay), (1,))

    # 1) Default config: generation-tuned large blocks, tiny params handled by XLA.
    loss = jax.block_until_ready(regularizer_forward(named_params, weight_decay, norm))
    assert loss.shape == (1,) and loss.dtype == jnp.float32
    assert jnp.allclose(loss, ref, rtol=1e-4, atol=1e-6), (loss, ref)

    # 2) Force every weight through the multi-block Pallas path (exercises native
    #    bf16 reads, 16-row sublane packing, pl.when-gated row-tail masking and
    #    trailing-dim tiling with column-tail masking).
    loss2 = jax.block_until_ready(
        regularizer_forward(named_params, weight_decay, norm,
                            block_bytes=16 * 1024, min_pallas_bytes=0))
    assert jnp.allclose(loss2, ref, rtol=1e-4, atol=1e-6), (loss2, ref)

    # 3) Force the 2-way row split (the v7x dual-TensorCore layout) on whatever
    #    chip we're on: exercises the parallel leading grid axis, per-split SMEM
    #    partials, clamped index_map and empty-block masking.
    loss3 = jax.block_until_ready(
        regularizer_forward(named_params, weight_decay, norm,
                            block_bytes=16 * 1024, min_pallas_bytes=0,
                            row_splits=2))
    assert jnp.allclose(loss3, ref, rtol=1e-4, atol=1e-6), (loss3, ref)

    print("KERNEL_OK")
</pallas_src>

<mosaic_0001>
module attributes {stable_mosaic.version = 11 : i64} {
  func.func @_pnorm_pow_kernel(%arg0: i32, %arg1: i32, %arg2: i32, %arg3: memref<520x64xf32, #tpu.memory_space<vmem>>, %arg4: memref<1x1xf32, #tpu.memory_space<smem>>, %arg5: memref<1x64xf32, #tpu.memory_space<vmem>>) attributes {dimension_semantics = [#tpu.dimension_semantics<parallel>, #tpu.dimension_semantics<arbitrary>, #tpu.dimension_semantics<arbitrary>], iteration_bounds = array<i64: 1, 1, 1>, scalar_prefetch = 0 : i64, scratch_operands = 1 : i64, tpu.core_type = #tpu.core_type<tc>, window_params = [{transform_indices = @transform_0, window_bounds = array<i64: 520, 64>}, {transform_indices = @transform_1, window_bounds = array<i64: 1, 1>}]} {
    %c0_i32 = arith.constant 0 : i32
    %0 = arith.cmpi eq, %arg1, %c0_i32 : i32
    %c0_i32_0 = arith.constant 0 : i32
    %1 = arith.cmpi eq, %arg2, %c0_i32_0 : i32
    %2 = arith.andi %0, %1 : i1
    %3 = arith.extui %2 : i1 to i32
    %c0_i32_1 = arith.constant 0 : i32
    %4 = arith.cmpi ne, %3, %c0_i32_1 : i32
    scf.if %4 {
      %cst_10 = arith.constant 0.000000e+00 : f32
      %17 = vector.broadcast %cst_10 : f32 to vector<1x64xf32>
      %c0_11 = arith.constant 0 : index
      %c0_12 = arith.constant 0 : index
      %18 = vector.load %arg5[%c0_11, %c0_12] : memref<1x64xf32, #tpu.memory_space<vmem>>, vector<1x64xf32>
      tpu.vector_store %arg5[%c0_11, %c0_12], %17 {strides = array<i32>} : memref<1x64xf32, #tpu.memory_space<vmem>>, vector<1x64xf32>,
    } else {
    }
    %c0 = arith.constant 0 : index
    %c0_2 = arith.constant 0 : index
    %5 = vector.load %arg3[%c0, %c0_2] : memref<520x64xf32, #tpu.memory_space<vmem>>, vector<520x64xf32>
    %c0_3 = arith.constant 0 : index
    %c0_4 = arith.constant 0 : index
    %6 = vector.load %arg5[%c0_3, %c0_4] : memref<1x64xf32, #tpu.memory_space<vmem>>, vector<1x64xf32>
    %7 = arith.mulf %5, %5 : vector<520x64xf32>
    %cst = arith.constant dense<0.000000e+00> : vector<64xf32>
    %8 = vector.multi_reduction <add>, %7, %cst [0] : vector<520x64xf32> to vector<64xf32>
    %9 = vector.shape_cast %8 : vector<64xf32> to vector<1x64xf32>
    %10 = arith.addf %6, %9 : vector<1x64xf32>
    %c0_5 = arith.constant 0 : index
    %c0_6 = arith.constant 0 : index
    %11 = vector.load %arg5[%c0_5, %c0_6] : memref<1x64xf32, #tpu.memory_space<vmem>>, vector<1x64xf32>
    tpu.vector_store %arg5[%c0_5, %c0_6], %10 {strides = array<i32>} : memref<1x64xf32, #tpu.memory_space<vmem>>, vector<1x64xf32>,
    %c0_i32_7 = arith.constant 0 : i32
    %12 = arith.cmpi eq, %arg1, %c0_i32_7 : i32
    %c0_i32_8 = arith.constant 0 : i32
    %13 = arith.cmpi eq, %arg2, %c0_i32_8 : i32
    %14 = arith.andi %12, %13 : i1
    %15 = arith.extui %14 : i1 to i32
    %c0_i32_9 = arith.constant 0 : i32
    %16 = arith.cmpi ne, %15, %c0_i32_9 : i32
    scf.if %16 {
      %c0_10 = arith.constant 0 : index
      %c0_11 = arith.constant 0 : index
      %17 = vector.load %arg5[%c0_10, %c0_11] : memref<1x64xf32, #tpu.memory_space<vmem>>, vector<1x64xf32>
      %18 = vector.shape_cast %17 : vector<1x64xf32> to vector<1x1x64xf32>
      %cst_12 = arith.constant dense<0.000000e+00> : vector<1xf32>
      %19 = vector.multi_reduction <add>, %18, %cst_12 [1, 2] : vector<1x1x64xf32> to vector<1xf32>
      %20 = vector.shape_cast %19 : vector<1xf32> to vector<1x1x1xf32>
      %21 = vector.extract %20[0, 0, 0] : f32 from vector<1x1x1xf32>
      %c0_13 = arith.constant 0 : index
      %c0_14 = arith.constant 0 : index
      %22 = memref.load %arg4[%c0_13, %c0_14] : memref<1x1xf32, #tpu.memory_space<smem>>
      memref.store %21, %arg4[%c0_13, %c0_14] : memref<1x1xf32, #tpu.memory_space<smem>>
    } else {
    }
    return
  }
  func.func @transform_0(%arg0: i32, %arg1: i32, %arg2: i32) -> (i32, i32) {
    %c1_i32 = arith.constant 1 : i32
    %0 = arith.muli %arg0, %c1_i32 : i32
    %1 = arith.addi %0, %arg1 : i32
    %c0_i32 = arith.constant 0 : i32
    %2 = arith.minsi %1, %c0_i32 : i32
    %c0_i32_0 = arith.constant 0 : i32
    return %2, %arg2 : i32, i32
  }
  func.func @transform_1(%arg0: i32, %arg1: i32, %arg2: i32) -> (i32, i32) {
    %c0_i32 = arith.constant 0 : i32
    %c0_i32_0 = arith.constant 0 : i32
    return %arg0, %c0_i32 : i32, i32
  }
}

</mosaic_0001>

<bundles_post_ra>
// kernel: tpu_custom_call.1
= control target key start
LH: loop header
LB: loop body
LE: loop exit
PB: predicated region body
PF: predicated region fallthrough
CT: control target
= control target key end

     0   :  { %vm47_vm0 = vcmask 516096   ;;  %vm180_vm1 = vcmask 523264   ;;  %v373_v3 = vmov 0.0   ;;  %s651_s0 = inlined_call_operand.vmem [shape: f32[520,64], index: 0, kind: input, shape index: {}]   ;;  %s652_s1 = inlined_call_operand.hbm [shape: f32[1,1], index: 1, kind: output, shape index: {}]  }
   0x1   :  { %v49_v0 = vld [vmem:[%s651_s0] sm:$0xff]  ;;  %v50_v1 = vld [vmem:[%s651_s0 + $0x8] sm:$0xff]  ;;  %v51_v2 = vld [vmem:[%s651_s0 + $0x10] sm:$0xff]  ;;  %48 = vst.msk [vmem:[#allocation2] sm:$0x1] %vm47_vm0, %v373_v3 }
   0x2   :  { %v52_v4 = vld [vmem:[%s651_s0 + $0x18] sm:$0xff]  ;;  %v115_v5 = vmul.f32 %v49_v0, %v49_v0  ;;  %v116_v6 = vmul.f32 %v50_v1, %v50_v1  ;;  %v117_v7 = vmul.f32 %v51_v2, %v51_v2  ;;  %v53_v8 = vld [vmem:[%s651_s0 + $0x20] sm:$0xff]  ;;  %v54_v12 = vld [vmem:[%s651_s0 + $0x28] sm:$0xff] }
   0x3   :  { %v118_v10 = vmul.f32 %v52_v4, %v52_v4  ;;  %v119_v14 = vmul.f32 %v53_v8, %v53_v8  ;;  %v55_v16 = vld [vmem:[%s651_s0 + $0x30] sm:$0xff]  ;;  %v120_v18 = vmul.f32 %v54_v12, %v54_v12  ;;  %v56_v20 = vld [vmem:[%s651_s0 + $0x38] sm:$0xff]  ;;  %v57_v24 = vld [vmem:[%s651_s0 + $0x40] sm:$0xff] }
   0x4   :  { %v181_v9 = vsel %vm180_vm1, %v115_v5, 0.0  ;;  %v182_v11 = vsel %vm180_vm1, %v116_v6, 0.0  ;;  %v184_v15 = vsel %vm180_vm1, %v117_v7, 0.0  ;;  %v121_v22 = vmul.f32 %v55_v16, %v55_v16  ;;  %v58_v28 = vld [vmem:[%s651_s0 + $0x48] sm:$0xff]  ;;  %v59_v32 = vld [vmem:[%s651_s0 + $0x50] sm:$0xff]  ;;  %v60_v33 = vld [vmem:[%s651_s0 + $0x58] sm:$0xff] }
   0x5   :  { %v183_v13 = vadd.f32 %v182_v11, %v181_v9  ;;  %v186_v19 = vsel %vm180_vm1, %v118_v10, 0.0  ;;  %v188_v23 = vsel %vm180_vm1, %v119_v14, 0.0  ;;  %v122_v26 = vmul.f32 %v56_v20, %v56_v20  ;;  %v61_v37 = vld [vmem:[%s651_s0 + $0x60] sm:$0xff]  ;;  %v62_v42 = vld [vmem:[%s651_s0 + $0x68] sm:$0xff]  ;;  %v63_v46 = vld [vmem:[%s651_s0 + $0x70] sm:$0xff] }
   0x6   :  { %v190_v27 = vsel %vm180_vm1, %v120_v18, 0.0  ;;  %v123_v30 = vmul.f32 %v57_v24, %v57_v24  ;;  %v192_v31 = vsel %vm180_vm1, %v121_v22, 0.0  ;;  %v124_v35 = vmul.f32 %v58_v28, %v58_v28 }
   0x7   :  { %v185_v17 = vadd.f32 %v184_v15, %v183_v13  ;;  %v194_v36 = vsel %vm180_vm1, %v122_v26, 0.0  ;;  %v125_v39 = vmul.f32 %v59_v32, %v59_v32  ;;  %v126_v40 = vmul.f32 %v60_v33, %v60_v33 }
   0x8   :  { %v196_v41 = vsel %vm180_vm1, %v123_v30, 0.0  ;;  %v127_v44 = vmul.f32 %v61_v37, %v61_v37  ;;  %v198_v45 = vsel %vm180_vm1, %v124_v35, 0.0  ;;  %v128_v48 = vmul.f32 %v62_v42, %v62_v42 }
   0x9   :  { %v187_v21 = vadd.f32 %v186_v19, %v185_v17  ;;  %v200_v49 = vsel %vm180_vm1, %v125_v39, 0.0  ;;  %v202_v50 = vsel %vm180_vm1, %v126_v40, 0.0 }
   0xb   :  { %v189_v25 = vadd.f32 %v188_v23, %v187_v21 }
   0xd   :  { %v191_v29 = vadd.f32 %v190_v27, %v189_v25 }
   0xf   :  { %v193_v34 = vadd.f32 %v192_v31, %v191_v29 }
  0x11   :  { %v195_v38 = vadd.f32 %v194_v36, %v193_v34 }
  0x13   :  { %v197_v43 = vadd.f32 %v196_v41, %v195_v38 }
  0x15   :  { %v199_v47 = vadd.f32 %v198_v45, %v197_v43 }
  0x16   :  { %6 = vsyncpa [#allocation4], 0  ;;  %v64_v51 = vld [vmem:[%s651_s0 + $0x78] sm:$0xff]  ;;  %v129_v53 = vmul.f32 %v63_v46, %v63_v46  ;;  %v204_v54 = vsel %vm180_vm1, %v127_v44, 0.0  ;;  %v65_v55 = vld [vmem:[%s651_s0 + $0x80] sm:$0xff]  ;;  %v206_v58 = vsel %vm180_vm1, %v128_v48, 0.0 }
  0x17   :  { %v201_v52 = vadd.f32 %v200_v49, %v199_v47  ;;  %v130_v57 = vmul.f32 %v64_v51, %v64_v51  ;;  %v66_v59 = vld [vmem:[%s651_s0 + $0x88] sm:$0xff]  ;;  %v131_v61 = vmul.f32 %v65_v55, %v65_v55  ;;  %v67_v63 = vld [vmem:[%s651_s0 + $0x90] sm:$0xff]  ;;  %v68_v3 = vld [vmem:[%s651_s0 + $0x98] sm:$0xff]  ;;  %s339_s21 = sshll.u32 %s652_s1, 4  ;;  %s374_s23 = smov [#allocation3]   ;;  %s340_s21 = int_to_ptr.hbm [resolvable:$true] %s339_s21 }
  0x18   :  { %v208_v62 = vsel %vm180_vm1, %v129_v53, 0.0  ;;  %v132_v1 = vmul.f32 %v66_v59, %v66_v59  ;;  %v133_v5 = vmul.f32 %v67_v63, %v67_v63  ;;  %v69_v7 = vld [vmem:[%s651_s0 + $0xa0] sm:$0xff]  ;;  %v134_v9 = vmul.f32 %v68_v3, %v68_v3  ;;  %v70_v11 = vld [vmem:[%s651_s0 + $0xa8] sm:$0xff]  ;;  %v71_v15 = vld [vmem:[%s651_s0 + $0xb0] sm:$0xff] }
  0x19   :  { %v203_v56 = vadd.f32 %v202_v50, %v201_v52  ;;  %v210_v2 = vsel %vm180_vm1, %v130_v57, 0.0  ;;  %v212_v6 = vsel %vm180_vm1, %v131_v61, 0.0  ;;  %v135_v13 = vmul.f32 %v69_v7, %v69_v7  ;;  %v72_v19 = vld [vmem:[%s651_s0 + $0xb8] sm:$0xff]  ;;  %v73_v23 = vld [vmem:[%s651_s0 + $0xc0] sm:$0xff]  ;;  %v74_v27 = vld [vmem:[%s651_s0 + $0xc8] sm:$0xff] }
  0x1a   :  { %v214_v10 = vsel %vm180_vm1, %v132_v1, 0.0  ;;  %v216_v14 = vsel %vm180_vm1, %v133_v5, 0.0  ;;  %v136_v17 = vmul.f32 %v70_v11, %v70_v11  ;;  %v218_v18 = vsel %vm180_vm1, %v134_v9, 0.0  ;;  %v75_v31 = vld [vmem:[%s651_s0 + $0xd0] sm:$0xff]  ;;  %v76_v35 = vld [vmem:[%s651_s0 + $0xd8] sm:$0xff]  ;;  %v77_v39 = vld [vmem:[%s651_s0 + $0xe0] sm:$0xff] }
  0x1b   :  { %v205_v60 = vadd.f32 %v204_v54, %v203_v56  ;;  %v137_v21 = vmul.f32 %v71_v15, %v71_v15  ;;  %v220_v22 = vsel %vm180_vm1, %v135_v13, 0.0  ;;  %v138_v25 = vmul.f32 %v72_v19, %v72_v19  ;;  %v78_v43 = vld [vmem:[%s651_s0 + $0xe8] sm:$0xff]  ;;  %v79_v47 = vld [vmem:[%s651_s0 + $0xf0] sm:$0xff]  ;;  %v80_v51 = vld [vmem:[%s651_s0 + $0xf8] sm:$0xff] }
  0x1c   :  { %v222_v26 = vsel %vm180_vm1, %v136_v17, 0.0  ;;  %v139_v29 = vmul.f32 %v73_v23, %v73_v23  ;;  %v140_v33 = vmul.f32 %v74_v27, %v74_v27  ;;  %v141_v37 = vmul.f32 %v75_v31, %v75_v31  ;;  %v81_v55 = vld [vmem:[%s651_s0 + $0x100] sm:$0xff]  ;;  %v82_v59 = vld [vmem:[%s651_s0 + $0x108] sm:$0xff]  ;;  %v83_v63 = vld [vmem:[%s651_s0 + $0x110] sm:$0xff] }
  0x1d   :  { %v207_v0 = vadd.f32 %v206_v58, %v205_v60  ;;  %v224_v30 = vsel %vm180_vm1, %v137_v21, 0.0  ;;  %v226_v34 = vsel %vm180_vm1, %v138_v25, 0.0  ;;  %v142_v41 = vmul.f32 %v76_v35, %v76_v35  ;;  %v84_v3 = vld [vmem:[%s651_s0 + $0x118] sm:$0xff]  ;;  %v85_v7 = vld [vmem:[%s651_s0 + $0x120] sm:$0xff]  ;;  %v86_v11 = vld [vmem:[%s651_s0 + $0x128] sm:$0xff] }
  0x1e   :  { %v228_v38 = vsel %vm180_vm1, %v139_v29, 0.0  ;;  %v230_v42 = vsel %vm180_vm1, %v140_v33, 0.0  ;;  %v143_v45 = vmul.f32 %v77_v39, %v77_v39  ;;  %v232_v46 = vsel %vm180_vm1, %v141_v37, 0.0  ;;  %v87_v15 = vld [vmem:[%s651_s0 + $0x130] sm:$0xff]  ;;  %v88_v19 = vld [vmem:[%s651_s0 + $0x138] sm:$0xff]  ;;  %v89_v23 = vld [vmem:[%s651_s0 + $0x140] sm:$0xff] }
  0x1f   :  { %v209_v4 = vadd.f32 %v208_v62, %v207_v0  ;;  %v144_v49 = vmul.f32 %v78_v43, %v78_v43  ;;  %v234_v50 = vsel %vm180_vm1, %v142_v41, 0.0  ;;  %v145_v53 = vmul.f32 %v79_v47, %v79_v47  ;;  %v90_v27 = vld [vmem:[%s651_s0 + $0x148] sm:$0xff]  ;;  %v91_v31 = vld [vmem:[%s651_s0 + $0x150] sm:$0xff]  ;;  %v92_v35 = vld [vmem:[%s651_s0 + $0x158] sm:$0xff] }
  0x20   :  { %v236_v54 = vsel %vm180_vm1, %v143_v45, 0.0  ;;  %v146_v57 = vmul.f32 %v80_v51, %v80_v51  ;;  %v147_v61 = vmul.f32 %v81_v55, %v81_v55  ;;  %v148_v1 = vmul.f32 %v82_v59, %v82_v59  ;;  %v93_v39 = vld [vmem:[%s651_s0 + $0x160] sm:$0xff]  ;;  %v94_v43 = vld [vmem:[%s651_s0 + $0x168] sm:$0xff]  ;;  %v95_v47 = vld [vmem:[%s651_s0 + $0x170] sm:$0xff] }
  0x21   :  { %v211_v8 = vadd.f32 %v210_v2, %v209_v4  ;;  %v238_v58 = vsel %vm180_vm1, %v144_v49, 0.0  ;;  %v240_v62 = vsel %vm180_vm1, %v145_v53, 0.0  ;;  %v149_v5 = vmul.f32 %v83_v63, %v83_v63  ;;  %v96_v51 = vld [vmem:[%s651_s0 + $0x178] sm:$0xff]  ;;  %v97_v55 = vld [vmem:[%s651_s0 + $0x180] sm:$0xff]  ;;  %v98_v59 = vld [vmem:[%s651_s0 + $0x188] sm:$0xff] }
  0x22   :  { %v242_v2 = vsel %vm180_vm1, %v146_v57, 0.0  ;;  %v150_v9 = vmul.f32 %v84_v3, %v84_v3  ;;  %v151_v13 = vmul.f32 %v85_v7, %v85_v7  ;;  %v152_v17 = vmul.f32 %v86_v11, %v86_v11  ;;  %v99_v63 = vld [vmem:[%s651_s0 + $0x190] sm:$0xff]  ;;  %v100_v3 = vld [vmem:[%s651_s0 + $0x198] sm:$0xff]  ;;  %v101_v7 = vld [vmem:[%s651_s0 + $0x1a0] sm:$0xff] }
  0x23   :  { %v213_v12 = vadd.f32 %v212_v6, %v211_v8  ;;  %v244_v6 = vsel %vm180_vm1, %v147_v61, 0.0  ;;  %v153_v21 = vmul.f32 %v87_v15, %v87_v15  ;;  %v154_v25 = vmul.f32 %v88_v19, %v88_v19  ;;  %v102_v11 = vld [vmem:[%s651_s0 + $0x1a8] sm:$0xff]  ;;  %v103_v15 = vld [vmem:[%s651_s0 + $0x1b0] sm:$0xff]  ;;  %v104_v19 = vld [vmem:[%s651_s0 + $0x1b8] sm:$0xff] }
  0x24   :  { %v155_v29 = vmul.f32 %v89_v23, %v89_v23  ;;  %v156_v33 = vmul.f32 %v90_v27, %v90_v27  ;;  %v157_v37 = vmul.f32 %v91_v31, %v91_v31  ;;  %v158_v41 = vmul.f32 %v92_v35, %v92_v35  ;;  %v105_v23 = vld [vmem:[%s651_s0 + $0x1c0] sm:$0xff]  ;;  %v106_v27 = vld [vmem:[%s651_s0 + $0x1c8] sm:$0xff]  ;;  %v107_v31 = vld [vmem:[%s651_s0 + $0x1d0] sm:$0xff] }
  0x25   :  { %v215_v16 = vadd.f32 %v214_v10, %v213_v12  ;;  %v246_v10 = vsel %vm180_vm1, %v148_v1, 0.0  ;;  %v159_v45 = vmul.f32 %v93_v39, %v93_v39  ;;  %v160_v49 = vmul.f32 %v94_v43, %v94_v43  ;;  %v108_v35 = vld [vmem:[%s651_s0 + $0x1d8] sm:$0xff]  ;;  %v109_v39 = vld [vmem:[%s651_s0 + $0x1e0] sm:$0xff]  ;;  %v110_v43 = vld [vmem:[%s651_s0 + $0x1e8] sm:$0xff] }
  0x26   :  { %v161_v53 = vmul.f32 %v95_v47, %v95_v47  ;;  %v162_v57 = vmul.f32 %v96_v51, %v96_v51  ;;  %v163_v61 = vmul.f32 %v97_v55, %v97_v55  ;;  %v164_v1 = vmul.f32 %v98_v59, %v98_v59  ;;  %v111_v47 = vld [vmem:[%s651_s0 + $0x1f0] sm:$0xff]  ;;  %v112_v51 = vld [vmem:[%s651_s0 + $0x1f8] sm:$0xff]  ;;  %v113_v55 = vld [vmem:[%s651_s0 + $0x200] sm:$0xff] }
  0x27   :  { %v217_v20 = vadd.f32 %v216_v14, %v215_v16  ;;  %v248_v14 = vsel %vm180_vm1, %v149_v5, 0.0  ;;  %v165_v5 = vmul.f32 %v99_v63, %v99_v63 }
  0x29   :  { %v219_v24 = vadd.f32 %v218_v18, %v217_v20  ;;  %v250_v18 = vsel %vm180_vm1, %v150_v9, 0.0  ;;  %v166_v9 = vmul.f32 %v100_v3, %v100_v3 }
  0x2b   :  { %v221_v28 = vadd.f32 %v220_v22, %v219_v24  ;;  %v252_v22 = vsel %vm180_vm1, %v151_v13, 0.0  ;;  %v167_v13 = vmul.f32 %v101_v7, %v101_v7 }
  0x2d   :  { %v223_v32 = vadd.f32 %v222_v26, %v221_v28  ;;  %v254_v26 = vsel %vm180_vm1, %v152_v17, 0.0  ;;  %v168_v17 = vmul.f32 %v102_v11, %v102_v11 }
  0x2f   :  { %v225_v36 = vadd.f32 %v224_v30, %v223_v32  ;;  %v256_v30 = vsel %vm180_vm1, %v153_v21, 0.0  ;;  %v169_v21 = vmul.f32 %v103_v15, %v103_v15 }
  0x31   :  { %v227_v40 = vadd.f32 %v226_v34, %v225_v36  ;;  %v258_v34 = vsel %vm180_vm1, %v154_v25, 0.0  ;;  %v170_v25 = vmul.f32 %v104_v19, %v104_v19 }
  0x33   :  { %v229_v44 = vadd.f32 %v228_v38, %v227_v40  ;;  %v260_v38 = vsel %vm180_vm1, %v155_v29, 0.0  ;;  %v171_v29 = vmul.f32 %v105_v23, %v105_v23 }
  0x35   :  { %v231_v48 = vadd.f32 %v230_v42, %v229_v44  ;;  %v262_v42 = vsel %vm180_vm1, %v156_v33, 0.0  ;;  %v172_v33 = vmul.f32 %v106_v27, %v106_v27 }
  0x37   :  { %v233_v52 = vadd.f32 %v232_v46, %v231_v48  ;;  %v264_v46 = vsel %vm180_vm1, %v157_v37, 0.0  ;;  %v173_v37 = vmul.f32 %v107_v31, %v107_v31 }
  0x39   :  { %v235_v56 = vadd.f32 %v234_v50, %v233_v52  ;;  %v266_v50 = vsel %vm180_vm1, %v158_v41, 0.0  ;;  %v174_v41 = vmul.f32 %v108_v35, %v108_v35 }
  0x3b   :  { %v237_v60 = vadd.f32 %v236_v54, %v235_v56  ;;  %v268_v54 = vsel %vm180_vm1, %v159_v45, 0.0  ;;  %v175_v45 = vmul.f32 %v109_v39, %v109_v39 }
  0x3d   :  { %v239_v0 = vadd.f32 %v238_v58, %v237_v60  ;;  %v270_v58 = vsel %vm180_vm1, %v160_v49, 0.0  ;;  %v176_v49 = vmul.f32 %v110_v43, %v110_v43 }
  0x3f   :  { %v241_v4 = vadd.f32 %v240_v62, %v239_v0  ;;  %v272_v62 = vsel %vm180_vm1, %v161_v53, 0.0  ;;  %v177_v53 = vmul.f32 %v111_v47, %v111_v47 }
  0x41   :  { %v243_v8 = vadd.f32 %v242_v2, %v241_v4  ;;  %v274_v2 = vsel %vm180_vm1, %v162_v57, 0.0  ;;  %v178_v57 = vmul.f32 %v112_v51, %v112_v51 }
  0x43   :  { %v245_v12 = vadd.f32 %v244_v6, %v243_v8  ;;  %v276_v6 = vsel %vm180_vm1, %v163_v61, 0.0  ;;  %v304_v61 = vsel %vm180_vm1, %v177_v53, 0.0  ;;  %v306_v63 = vsel %vm180_vm1, %v178_v57, 0.0 }
  0x45   :  { %v247_v16 = vadd.f32 %v246_v10, %v245_v12  ;;  %v278_v10 = vsel %vm180_vm1, %v164_v1, 0.0 }
  0x47   :  { %v249_v20 = vadd.f32 %v248_v14, %v247_v16  ;;  %v280_v14 = vsel %vm180_vm1, %v165_v5, 0.0 }
  0x49   :  { %v251_v24 = vadd.f32 %v250_v18, %v249_v20  ;;  %v282_v18 = vsel %vm180_vm1, %v166_v9, 0.0  ;;  %v114_v9 = vld [vmem:[#allocation2] sm:$0x1] }
  0x4b   :  { %v253_v28 = vadd.f32 %v252_v22, %v251_v24  ;;  %v284_v22 = vsel %vm180_vm1, %v167_v13, 0.0 }
  0x4d   :  { %v255_v32 = vadd.f32 %v254_v26, %v253_v28  ;;  %v286_v26 = vsel %vm180_vm1, %v168_v17, 0.0 }
  0x4f   :  { %v257_v36 = vadd.f32 %v256_v30, %v255_v32  ;;  %v288_v30 = vsel %vm180_vm1, %v169_v21, 0.0 }
  0x51   :  { %v259_v40 = vadd.f32 %v258_v34, %v257_v36  ;;  %v290_v34 = vsel %vm180_vm1, %v170_v25, 0.0 }
  0x53   :  { %v261_v44 = vadd.f32 %v260_v38, %v259_v40  ;;  %v292_v38 = vsel %vm180_vm1, %v171_v29, 0.0 }
  0x55   :  { %v263_v48 = vadd.f32 %v262_v42, %v261_v44  ;;  %v294_v42 = vsel %vm180_vm1, %v172_v33, 0.0 }
  0x57   :  { %v265_v52 = vadd.f32 %v264_v46, %v263_v48  ;;  %v296_v46 = vsel %vm180_vm1, %v173_v37, 0.0 }
  0x59   :  { %v267_v56 = vadd.f32 %v266_v50, %v265_v52  ;;  %v298_v50 = vsel %vm180_vm1, %v174_v41, 0.0 }
  0x5b   :  { %v269_v60 = vadd.f32 %v268_v54, %v267_v56  ;;  %v300_v54 = vsel %vm180_vm1, %v175_v45, 0.0 }
  0x5d   :  { %v271_v0 = vadd.f32 %v270_v58, %v269_v60  ;;  %v302_v58 = vsel %vm180_vm1, %v176_v49, 0.0  ;;  %v179_v60 = vmul.f32 %v113_v55, %v113_v55 }
  0x5f   :  { %v273_v4 = vadd.f32 %v272_v62, %v271_v0  ;;  %v308_v1 = vsel %vm180_vm1, %v179_v60, 0.0 }
  0x61   :  { %v275_v8 = vadd.f32 %v274_v2, %v273_v4 }
  0x63   :  { %v277_v12 = vadd.f32 %v276_v6, %v275_v8 }
  0x65   :  { %v279_v16 = vadd.f32 %v278_v10, %v277_v12 }
  0x67   :  { %v281_v20 = vadd.f32 %v280_v14, %v279_v16 }
  0x69   :  { %v283_v24 = vadd.f32 %v282_v18, %v281_v20 }
  0x6b   :  { %v285_v28 = vadd.f32 %v284_v22, %v283_v24 }
  0x6d   :  { %v287_v32 = vadd.f32 %v286_v26, %v285_v28 }
  0x6f   :  { %v289_v36 = vadd.f32 %v288_v30, %v287_v32 }
  0x71   :  { %v291_v40 = vadd.f32 %v290_v34, %v289_v36 }
  0x73   :  { %v293_v44 = vadd.f32 %v292_v38, %v291_v40 }
  0x75   :  { %v295_v48 = vadd.f32 %v294_v42, %v293_v44 }
  0x77   :  { %v297_v52 = vadd.f32 %v296_v46, %v295_v48 }
  0x79   :  { %v299_v56 = vadd.f32 %v298_v50, %v297_v52 }
  0x7b   :  { %v301_v59 = vadd.f32 %v300_v54, %v299_v56 }
  0x7d   :  { %v303_v62 = vadd.f32 %v302_v58, %v301_v59 }
  0x7f   :  { %v305_v0 = vadd.f32 %v304_v61, %v303_v62 }
  0x81   :  { %v307_v2 = vadd.f32 %v306_v63, %v305_v0 }
  0x83   :  { %v309_v3 = vadd.f32 %v308_v1, %v307_v2 }
  0x85   :  { %v310_v4 = vrot.slane %v309_v3, 4 }
  0x87   :  { %v311_v5 = vadd.f32 %v310_v4, %v309_v3 }
  0x89   :  { %v312_v6 = vrot.slane %v311_v5, 2 }
  0x8b   :  { %v313_v7 = vadd.f32 %v312_v6, %v311_v5 }
  0x8d   :  { %v314_v8 = vrot.slane %v313_v7, 1 }
  0x8f   :  { %v315_v10 = vadd.f32 %v314_v8, %v313_v7 }
  0x91   :  { %v316_v11 = vadd.f32 %v315_v10, %v114_v9 }
  0x93   :  { %318 = vst.msk [vmem:[#allocation2] sm:$0x1] %vm47_vm0, %v316_v11 }
  0x9a   :  { %v321_v12 = vld [vmem:[#allocation2] sm:$0x1] }
  0x9b   :  { %v322_v13 = vsel %vm47_vm0, %v321_v12, 0.0 }
  0x9c   :  { %323 = vadd.xlane.f32.xlu0 %v322_v13 }
 0x10f   :  { %v324_v14 = vpop.xlane.xlu0 %323 }
 0x110   :  { %v325_v15 = vrot.slane %v324_v14, 4 }
 0x112   :  { %v326_v16 = vadd.f32 %v325_v15, %v324_v14 }
 0x114   :  { %v327_v17 = vrot.slane %v326_v16, 2 }
 0x116   :  { %v328_v18 = vadd.f32 %v327_v17, %v326_v16 }
 0x118   :  { %v329_v19 = vrot.slane %v328_v18, 1 }
 0x11a   :  { %v330_v20 = vadd.f32 %v329_v19, %v328_v18 }
 0x11c   :  { %355 = vpush %v330_v20 }
 0x14d   :  { %s356_s22 = spop %355 }
 0x14e   :  { %333 = sst [smem:[#allocation3]] %s356_s22 }
 0x14f   :  { %342 = dma.smem_to_hbm %s374_s23, 16, %s340_s21, [#allocation4]  }
 0x150   :  { %371 = dma.done.wait [#allocation4], 16  }
 0x151   :  { %372 = vsyncadd [#allocation4], 4294967280 }
 0x152   :  { %347 = sfence }
 0x153   :  { %348 = vsyncpa [#allocation4], 1 }

</bundles_post_ra>
